<compile_context>
chip_gen: v7x
topology: tpu7x:2x2x1
jax: 0.10.0
libtpu: 0.0.40
codegen_flags: <defaults>
</compile_context>

<pallas_src>
import functools

import jax
import jax.numpy as jnp
from jax.experimental import pallas as pl
from jax.experimental.pallas import tpu as pltpu


EPS = 1e-6


def _round_up(v, m):
    return ((v + m - 1) // m) * m


# ---------------------------------------------------------------------------
# Kernels
# ---------------------------------------------------------------------------
def _mdn_kernel_fused(x_ref, w1_ref, b1_ref, w2_ref, b2_ref,
                      wpi_ref, bpi_ref, wms_ref, bms_ref,
                      log_pi_ref, ms_ref, *, compute_dtype, kd):
    """Small-H path: both towers fused into one 'wide' MLP."""
    x = x_ref[...]

    def dot(a, w_ref):
        # MXU matmul; operands optionally bf16, always f32 accumulation.
        return jnp.dot(a.astype(compute_dtype), w_ref[...],
                       preferred_element_type=jnp.float32)

    h = jnp.maximum(dot(x, w1_ref) + b1_ref[...], 0.0)   # (TB, 2H)
    h = jnp.maximum(dot(h, w2_ref) + b2_ref[...], 0.0)   # block-diagonal w2

    # --- pi head + numerically stable log_softmax ---
    pi_logits = dot(h, wpi_ref) + bpi_ref[...]
    m = jnp.max(pi_logits, axis=-1, keepdims=True)
    lse = jnp.log(jnp.sum(jnp.exp(pi_logits - m), axis=-1, keepdims=True)) + m
    log_pi_ref[...] = pi_logits - lse

    # --- fused mu|sigma head: one matmul, one output stream; exp applied only
    #     to the sigma columns (eps stays inside the exponent, as in PyTorch).
    ms = dot(h, wms_ref) + bms_ref[...]
    col = jax.lax.broadcasted_iota(jnp.int32, ms.shape, 1)
    ms_ref[...] = jnp.where(col >= kd, jnp.exp(ms + EPS), ms).astype(ms_ref.dtype)


def _mdn_kernel_split(x_ref, w1_ref, b1_ref,
                      w2p_ref, b2p_ref, w2n_ref, b2n_ref,
                      wpi_ref, bpi_ref, wms_ref, bms_ref,
                      log_pi_ref, ms_ref, *, compute_dtype, hidden, kd):
    """H % 128 == 0 path: layer 1 fused, then split h at a lane-tile-aligned
    column; layer 2 / heads use the original un-padded weights."""
    x = x_ref[...]

    def dot(a, w_ref):
        return jnp.dot(a.astype(compute_dtype), w_ref[...],
                       preferred_element_type=jnp.float32)

    h = jnp.maximum(dot(x, w1_ref) + b1_ref[...], 0.0)    # (TB, 2H)
    h_pi = h[:, :hidden]                                   # lane-aligned slice
    h_nm = h[:, hidden:]
    h_pi = jnp.maximum(dot(h_pi, w2p_ref) + b2p_ref[...], 0.0)
    h_nm = jnp.maximum(dot(h_nm, w2n_ref) + b2n_ref[...], 0.0)

    pi_logits = dot(h_pi, wpi_ref) + bpi_ref[...]
    m = jnp.max(pi_logits, axis=-1, keepdims=True)
    lse = jnp.log(jnp.sum(jnp.exp(pi_logits - m), axis=-1, keepdims=True)) + m
    log_pi_ref[...] = pi_logits - lse

    ms = dot(h_nm, wms_ref) + bms_ref[...]
    col = jax.lax.broadcasted_iota(jnp.int32, ms.shape, 1)
    ms_ref[...] = jnp.where(col >= kd, jnp.exp(ms + EPS), ms).astype(ms_ref.dtype)


# ---------------------------------------------------------------------------
# One-time parameter packing (call at init, NOT per forward)
# ---------------------------------------------------------------------------
def pack_params(params, n_mixtures, out_features, use_bf16=False):
    """Repack the 12 per-layer (in,out) weights/biases into the kernel layout.

    Returns (weights, cfg); cfg holds the static kwargs for mdn_forward.
    """
    (pw1, pb1, pw2, pb2, pw3, pb3,
     nw1, nb1, nw2, nb2, nw3, nb3) = params
    H = pw1.shape[1]
    kd = n_mixtures * out_features
    f32 = jnp.float32
    wd = jnp.bfloat16 if use_bf16 else jnp.float32
    split = (H % 128 == 0)

    # Layer 1: pi | normal concatenated along hidden (free for both paths).
    w1 = jnp.concatenate([pw1, nw1], axis=1).astype(wd)        # (in, 2H)
    b1 = jnp.concatenate([pb1, nb1], axis=1).astype(f32)       # (1, 2H)

    if split:
        weights = (w1, b1,
                   pw2.astype(wd), pb2.astype(f32),            # (H,H) pi
                   nw2.astype(wd), nb2.astype(f32),            # (H,H) normal
                   pw3.astype(wd), pb3.astype(f32),            # (H,K) pi head
                   nw3.astype(wd), nb3.astype(f32))            # (H,2kd) mu|sigma
    else:
        K = pw3.shape[1]
        # Layer 2: block-diagonal so the towers stay independent.
        w2 = jnp.zeros((2 * H, 2 * H), f32)
        w2 = w2.at[:H, :H].set(pw2).at[H:, H:].set(nw2).astype(wd)
        b2 = jnp.concatenate([pb2, nb2], axis=1).astype(f32)
        # Heads: zero rows select the correct tower half (zeros exact in bf16).
        wpi = jnp.concatenate([pw3, jnp.zeros((H, K), f32)], axis=0).astype(wd)
        wms = jnp.concatenate([jnp.zeros((H, 2 * kd), f32), nw3],
                              axis=0).astype(wd)
        weights = (w1, b1, w2, b2, wpi, pb3.astype(f32), wms, nb3.astype(f32))

    cfg = dict(hidden=H, split=split, use_bf16=use_bf16)
    return weights, cfg


# ---------------------------------------------------------------------------
# Forward wrapper
# ---------------------------------------------------------------------------
def mdn_forward(x, weights, *, n_mixtures, out_features, hidden, split,
                use_bf16=False, batch_tile=None, output_dtype=jnp.float32):
    """Returns (log_pi, mu, sigma) like the PyTorch module (DIAGONAL noise).

    `weights` comes from pack_params (packed once at init). x is passed in its
    original dtype; the compute-dtype cast happens inside the kernel.
    """
    B, in_features = x.shape
    kd = n_mixtures * out_features
    compute_dtype = jnp.bfloat16 if use_bf16 else jnp.float32

    # Batch tile: sublane-aligned; >=2 grid steps when B allows (v7x megacore),
    # capped at 2048 to amortize per-step pipeline overhead.
    sub = 16 if x.dtype == jnp.bfloat16 else 8
    cap = 2048
    if batch_tile is None:
        if B > 2 * sub:
            tb = min(cap, _round_up(pl.cdiv(B, 2), sub))
        else:
            tb = _round_up(B, sub)
    else:
        tb = _round_up(min(batch_tile, cap), sub)
    grid = (pl.cdiv(B, tb),)

    def batch_spec(feat):
        return pl.BlockSpec((tb, feat), lambda i: (i, 0))

    def whole_spec(a):
        # Constant block index -> weights stay resident in VMEM across steps.
        return pl.BlockSpec(a.shape, lambda i: (0,) * a.ndim)

    in_specs = [batch_spec(in_features)] + [whole_spec(a) for a in weights]
    out_specs = (batch_spec(n_mixtures), batch_spec(2 * kd))
    out_shapes = (
        jax.ShapeDtypeStruct((B, n_mixtures), jnp.float32),     # log_pi (f32)
        jax.ShapeDtypeStruct((B, 2 * kd), output_dtype),        # mu|sigma
    )

    if split:
        kernel = functools.partial(_mdn_kernel_split,
                                   compute_dtype=compute_dtype,
                                   hidden=hidden, kd=kd)
    else:
        kernel = functools.partial(_mdn_kernel_fused,
                                   compute_dtype=compute_dtype, kd=kd)

    # VMEM budget, accounting for the default 2x buffering of the resident
    # whole-array weights and the per-batch tiles.  Only set an explicit limit
    # when it exceeds the default scoped limit (re-check vs v7x's 64 MiB
    # physical VMEM at very large H / TB).
    w_bytes = sum(a.size * a.dtype.itemsize for a in weights)
    row_bytes = (in_features * x.dtype.itemsize
                 + max(n_mixtures, 128) * 4
                 + max(2 * kd, 128) * jnp.dtype(output_dtype).itemsize)
    budget = 2 * (w_bytes + tb * row_bytes) + (4 << 20)
    cp = dict(dimension_semantics=("parallel",))   # megacore batch sharding
    if budget > (32 << 20):
        cp["vmem_limit_bytes"] = min(budget, 96 << 20)
    compiler_params = pltpu.CompilerParams(**cp)

    log_pi, ms = pl.pallas_call(
        kernel,
        grid=grid,
        out_shape=out_shapes,
        in_specs=in_specs,
        out_specs=out_specs,
        compiler_params=compiler_params,
    )(x, *weights)

    # Free slice + reshape on a contiguous array (done in XLA, not in-kernel).
    mu = ms[:, :kd].reshape(B, n_mixtures, out_features)
    sigma = ms[:, kd:].reshape(B, n_mixtures, out_features)
    return log_pi, mu, sigma


# ---------------------------------------------------------------------------
# Init + reference
# ---------------------------------------------------------------------------
def init_params(key, in_features, hidden_size, n_mixtures, out_features):
    """Deterministic PyTorch-Linear-style init. Weights stored as (in, out)."""
    kd = n_mixtures * out_features
    num_sigma = kd  # DIAGONAL noise
    layer_dims = [
        # pi network
        (in_features, hidden_size), (hidden_size, hidden_size),
        (hidden_size, n_mixtures),
        # normal network
        (in_features, hidden_size), (hidden_size, hidden_size),
        (hidden_size, kd + num_sigma),
    ]
    params = []
    keys = jax.random.split(key, 2 * len(layer_dims))
    for i, (fan_in, fan_out) in enumerate(layer_dims):
        bound = 1.0 / jnp.sqrt(jnp.float32(fan_in))
        w = jax.random.uniform(keys[2 * i], (fan_in, fan_out),
                               minval=-bound, maxval=bound, dtype=jnp.float32)
        b = jax.random.uniform(keys[2 * i + 1], (1, fan_out),
                               minval=-bound, maxval=bound, dtype=jnp.float32)
        params.extend([w, b])
    return tuple(params)


def ref_forward(x, params, n_mixtures, out_features):
    """Plain-JAX reference (un-fused, f32)."""
    (pw1, pb1, pw2, pb2, pw3, pb3,
     nw1, nb1, nw2, nb2, nw3, nb3) = params
    h = jnp.maximum(x @ pw1 + pb1, 0.0)
    h = jnp.maximum(h @ pw2 + pb2, 0.0)
    log_pi = jax.nn.log_softmax(h @ pw3 + pb3, axis=-1)
    g = jnp.maximum(x @ nw1 + nb1, 0.0)
    g = jnp.maximum(g @ nw2 + nb2, 0.0)
    normal = g @ nw3 + nb3
    kd = n_mixtures * out_features
    mu = normal[:, :kd].reshape(-1, n_mixtures, out_features)
    sigma = jnp.exp(normal[:, kd:] + EPS).reshape(-1, n_mixtures, out_features)
    return log_pi, mu, sigma


if __name__ == "__main__":
    key = jax.random.PRNGKey(0)
    in_features, out_features, n_mixtures = 16, 4, 5

    # --- Test 1: fused small-H path (H=32), f32 compute / f32 outputs. ---
    B, H = 8, 32
    k_x, k_p, key = jax.random.split(key, 3)
    x = jax.random.normal(k_x, (B, in_features), dtype=jnp.float32)
    params = init_params(k_p, in_features, H, n_mixtures, out_features)
    weights, cfg = pack_params(params, n_mixtures, out_features)   # pack once
    fwd = jax.jit(functools.partial(mdn_forward, n_mixtures=n_mixtures,
                                    out_features=out_features, **cfg))
    log_pi, mu, sigma = fwd(x, weights)
    jax.block_until_ready((log_pi, mu, sigma))

    r_log_pi, r_mu, r_sigma = ref_forward(x, params, n_mixtures, out_features)
    assert log_pi.shape == (B, n_mixtures)
    assert mu.shape == (B, n_mixtures, out_features)
    assert sigma.shape == (B, n_mixtures, out_features)
    assert jnp.allclose(log_pi, r_log_pi, atol=1e-5)
    assert jnp.allclose(mu, r_mu, atol=1e-5)
    assert jnp.allclose(sigma, r_sigma, atol=1e-5)

    # --- Test 2: split path (H=128, lane-aligned) with a multi-step grid and
    #     a partial last batch tile. ---
    B2, H2 = 20, 128
    k_x2, k_p2, key = jax.random.split(key, 3)
    x2 = jax.random.normal(k_x2, (B2, in_features), dtype=jnp.float32)
    params2 = init_params(k_p2, in_features, H2, n_mixtures, out_features)
    weights2, cfg2 = pack_params(params2, n_mixtures, out_features)
    fwd2 = jax.jit(functools.partial(mdn_forward, n_mixtures=n_mixtures,
                                     out_features=out_features, **cfg2))
    log_pi2, mu2, sigma2 = fwd2(x2, weights2)
    jax.block_until_ready((log_pi2, mu2, sigma2))
    r2_log_pi, r2_mu, r2_sigma = ref_forward(x2, params2, n_mixtures,
                                             out_features)
    assert jnp.allclose(log_pi2, r2_log_pi, atol=1e-4)
    assert jnp.allclose(mu2, r2_mu, atol=1e-4)
    assert jnp.allclose(sigma2, r2_sigma, atol=1e-4)

    # --- Test 3: bf16 MXU operands + bf16 mu/sigma outputs (v6e/v7x path);
    #     log_pi stays f32.  Loose tolerance vs the f32 reference. ---
    weights_bf, cfg_bf = pack_params(params, n_mixtures, out_features,
                                     use_bf16=True)
    fwd_bf = jax.jit(functools.partial(mdn_forward, n_mixtures=n_mixtures,
                                       out_features=out_features,
                                       output_dtype=jnp.bfloat16, **cfg_bf))
    b_log_pi, b_mu, b_sigma = fwd_bf(x, weights_bf)
    jax.block_until_ready((b_log_pi, b_mu, b_sigma))
    assert b_log_pi.dtype == jnp.float32
    assert b_mu.dtype == jnp.bfloat16 and b_sigma.dtype == jnp.bfloat16
    assert jnp.all(jnp.isfinite(b_log_pi))
    assert jnp.all(jnp.isfinite(b_mu.astype(jnp.float32)))
    assert jnp.all(jnp.isfinite(b_sigma.astype(jnp.float32)))
    assert jnp.allclose(b_log_pi, r_log_pi, atol=1e-1, rtol=1e-1)
    assert jnp.allclose(b_mu.astype(jnp.float32), r_mu, atol=1e-1, rtol=1e-1)
    assert jnp.allclose(b_sigma.astype(jnp.float32), r_sigma,
                        atol=1e-1, rtol=1e-1)

    print("KERNEL_OK")
</pallas_src>

<mosaic_0001>
module attributes {stable_mosaic.version = 11 : i64} {
  func.func @_mdn_kernel_fused(%arg0: i32, %arg1: memref<8x16xf32, #tpu.memory_space<vmem>>, %arg2: memref<16x64xf32, #tpu.memory_space<vmem>>, %arg3: memref<1x64xf32, #tpu.memory_space<vmem>>, %arg4: memref<64x64xf32, #tpu.memory_space<vmem>>, %arg5: memref<1x64xf32, #tpu.memory_space<vmem>>, %arg6: memref<64x5xf32, #tpu.memory_space<vmem>>, %arg7: memref<1x5xf32, #tpu.memory_space<vmem>>, %arg8: memref<64x40xf32, #tpu.memory_space<vmem>>, %arg9: memref<1x40xf32, #tpu.memory_space<vmem>>, %arg10: memref<8x5xf32, #tpu.memory_space<vmem>>, %arg11: memref<8x40xf32, #tpu.memory_space<vmem>>) attributes {dimension_semantics = [#tpu.dimension_semantics<parallel>], iteration_bounds = array<i64: 1>, scalar_prefetch = 0 : i64, scratch_operands = 0 : i64, tpu.core_type = #tpu.core_type<tc>, window_params = [{transform_indices = @transform_0, window_bounds = array<i64: 8, 16>}, {pipeline_mode = #tpu.pipeline_mode<synchronous>, transform_indices = @transform_1, window_bounds = array<i64: 16, 64>}, {pipeline_mode = #tpu.pipeline_mode<synchronous>, transform_indices = @transform_2, window_bounds = array<i64: 1, 64>}, {pipeline_mode = #tpu.pipeline_mode<synchronous>, transform_indices = @transform_3, window_bounds = array<i64: 64, 64>}, {pipeline_mode = #tpu.pipeline_mode<synchronous>, transform_indices = @transform_4, window_bounds = array<i64: 1, 64>}, {pipeline_mode = #tpu.pipeline_mode<synchronous>, transform_indices = @transform_5, window_bounds = array<i64: 64, 5>}, {pipeline_mode = #tpu.pipeline_mode<synchronous>, transform_indices = @transform_6, window_bounds = array<i64: 1, 5>}, {pipeline_mode = #tpu.pipeline_mode<synchronous>, transform_indices = @transform_7, window_bounds = array<i64: 64, 40>}, {pipeline_mode = #tpu.pipeline_mode<synchronous>, transform_indices = @transform_8, window_bounds = array<i64: 1, 40>}, {transform_indices = @transform_9, window_bounds = array<i64: 8, 5>}, {transform_indices = @transform_10, window_bounds = array<i64: 8, 40>}]} {
    %c0 = arith.constant 0 : index
    %c0_0 = arith.constant 0 : index
    %0 = vector.load %arg1[%c0, %c0_0] : memref<8x16xf32, #tpu.memory_space<vmem>>, vector<8x16xf32>
    %c0_1 = arith.constant 0 : index
    %c0_2 = arith.constant 0 : index
    %1 = vector.load %arg2[%c0_1, %c0_2] : memref<16x64xf32, #tpu.memory_space<vmem>>, vector<16x64xf32>
    %cst = arith.constant dense<0.000000e+00> : vector<8x64xf32>
    %2 = tpu.matmul %0, %1, %cst {dimension_numbers = #tpu.dot_dimension_numbers<[1], [0], [0], [1], [0, 0, 1, 1], [], []>} : vector<8x16xf32>, vector<16x64xf32>, vector<8x64xf32> -> vector<8x64xf32>
    %c0_3 = arith.constant 0 : index
    %c0_4 = arith.constant 0 : index
    %3 = vector.load %arg3[%c0_3, %c0_4] : memref<1x64xf32, #tpu.memory_space<vmem>>, vector<1x64xf32>
    %4 = vector.broadcast %3 : vector<1x64xf32> to vector<8x64xf32>
    %5 = arith.addf %2, %4 : vector<8x64xf32>
    %cst_5 = arith.constant 0.000000e+00 : f32
    %6 = vector.broadcast %cst_5 : f32 to vector<8x64xf32>
    %7 = arith.maximumf %5, %6 : vector<8x64xf32>
    %c0_6 = arith.constant 0 : index
    %c0_7 = arith.constant 0 : index
    %8 = vector.load %arg4[%c0_6, %c0_7] : memref<64x64xf32, #tpu.memory_space<vmem>>, vector<64x64xf32>
    %cst_8 = arith.constant dense<0.000000e+00> : vector<8x64xf32>
    %9 = tpu.matmul %7, %8, %cst_8 {dimension_numbers = #tpu.dot_dimension_numbers<[1], [0], [0], [1], [0, 0, 1, 1], [], []>} : vector<8x64xf32>, vector<64x64xf32>, vector<8x64xf32> -> vector<8x64xf32>
    %c0_9 = arith.constant 0 : index
    %c0_10 = arith.constant 0 : index
    %10 = vector.load %arg5[%c0_9, %c0_10] : memref<1x64xf32, #tpu.memory_space<vmem>>, vector<1x64xf32>
    %11 = vector.broadcast %10 : vector<1x64xf32> to vector<8x64xf32>
    %12 = arith.addf %9, %11 : vector<8x64xf32>
    %cst_11 = arith.constant 0.000000e+00 : f32
    %13 = vector.broadcast %cst_11 : f32 to vector<8x64xf32>
    %14 = arith.maximumf %12, %13 : vector<8x64xf32>
    %c0_12 = arith.constant 0 : index
    %c0_13 = arith.constant 0 : index
    %15 = vector.load %arg6[%c0_12, %c0_13] : memref<64x5xf32, #tpu.memory_space<vmem>>, vector<64x5xf32>
    %cst_14 = arith.constant dense<0.000000e+00> : vector<8x5xf32>
    %16 = tpu.matmul %14, %15, %cst_14 {dimension_numbers = #tpu.dot_dimension_numbers<[1], [0], [0], [1], [0, 0, 1, 1], [], []>} : vector<8x64xf32>, vector<64x5xf32>, vector<8x5xf32> -> vector<8x5xf32>
    %c0_15 = arith.constant 0 : index
    %c0_16 = arith.constant 0 : index
    %17 = vector.load %arg7[%c0_15, %c0_16] : memref<1x5xf32, #tpu.memory_space<vmem>>, vector<1x5xf32>
    %18 = vector.broadcast %17 : vector<1x5xf32> to vector<8x5xf32>
    %19 = arith.addf %16, %18 : vector<8x5xf32>
    %cst_17 = arith.constant dense<0xFF800000> : vector<8xf32>
    %20 = vector.multi_reduction <maximumf>, %19, %cst_17 [1] : vector<8x5xf32> to vector<8xf32>
    %21 = vector.shape_cast %20 : vector<8xf32> to vector<8x1xf32>
    %22 = vector.broadcast %21 : vector<8x1xf32> to vector<8x5xf32>
    %23 = arith.subf %19, %22 : vector<8x5xf32>
    %24 = math.exp %23 : vector<8x5xf32>
    %cst_18 = arith.constant dense<0.000000e+00> : vector<8xf32>
    %25 = vector.multi_reduction <add>, %24, %cst_18 [1] : vector<8x5xf32> to vector<8xf32>
    %26 = vector.shape_cast %25 : vector<8xf32> to vector<8x1xf32>
    %27 = math.log %26 : vector<8x1xf32>
    %28 = arith.addf %27, %21 : vector<8x1xf32>
    %29 = vector.broadcast %28 : vector<8x1xf32> to vector<8x5xf32>
    %30 = arith.subf %19, %29 : vector<8x5xf32>
    %c0_19 = arith.constant 0 : index
    %c0_20 = arith.constant 0 : index
    %31 = vector.load %arg10[%c0_19, %c0_20] : memref<8x5xf32, #tpu.memory_space<vmem>>, vector<8x5xf32>
    tpu.vector_store %arg10[%c0_19, %c0_20], %30 {strides = array<i32>} : memref<8x5xf32, #tpu.memory_space<vmem>>, vector<8x5xf32>,
    %c0_21 = arith.constant 0 : index
    %c0_22 = arith.constant 0 : index
    %32 = vector.load %arg8[%c0_21, %c0_22] : memref<64x40xf32, #tpu.memory_space<vmem>>, vector<64x40xf32>
    %cst_23 = arith.constant dense<0.000000e+00> : vector<8x40xf32>
    %33 = tpu.matmul %14, %32, %cst_23 {dimension_numbers = #tpu.dot_dimension_numbers<[1], [0], [0], [1], [0, 0, 1, 1], [], []>} : vector<8x64xf32>, vector<64x40xf32>, vector<8x40xf32> -> vector<8x40xf32>
    %c0_24 = arith.constant 0 : index
    %c0_25 = arith.constant 0 : index
    %34 = vector.load %arg9[%c0_24, %c0_25] : memref<1x40xf32, #tpu.memory_space<vmem>>, vector<1x40xf32>
    %35 = vector.broadcast %34 : vector<1x40xf32> to vector<8x40xf32>
    %36 = arith.addf %33, %35 : vector<8x40xf32>
    %37 = tpu.iota {dimensions = array<i32: 1>} : vector<8x40xi32>
    %c20_i32 = arith.constant 20 : i32
    %38 = vector.broadcast %c20_i32 : i32 to vector<8x40xi32>
    %39 = arith.cmpi sge, %37, %38 : vector<8x40xi32>
    %cst_26 = arith.constant 9.99999997E-7 : f32
    %40 = vector.broadcast %cst_26 : f32 to vector<8x40xf32>
    %41 = arith.addf %36, %40 : vector<8x40xf32>
    %42 = math.exp %41 : vector<8x40xf32>
    %43 = arith.select %39, %42, %36 : vector<8x40xi1>, vector<8x40xf32>
    %c0_27 = arith.constant 0 : index
    %c0_28 = arith.constant 0 : index
    %44 = vector.load %arg11[%c0_27, %c0_28] : memref<8x40xf32, #tpu.memory_space<vmem>>, vector<8x40xf32>
    tpu.vector_store %arg11[%c0_27, %c0_28], %43 {strides = array<i32>} : memref<8x40xf32, #tpu.memory_space<vmem>>, vector<8x40xf32>,
    return
  }
  func.func @transform_0(%arg0: i32) -> (i32, i32) {
    %c0_i32 = arith.constant 0 : i32
    %c0_i32_0 = arith.constant 0 : i32
    return %arg0, %c0_i32 : i32, i32
  }
  func.func @transform_1(%arg0: i32) -> (i32, i32) {
    %c0_i32 = arith.constant 0 : i32
    %c0_i32_0 = arith.constant 0 : i32
    %c0_i32_1 = arith.constant 0 : i32
    return %c0_i32, %c0_i32_0 : i32, i32
  }
  func.func @transform_2(%arg0: i32) -> (i32, i32) {
    %c0_i32 = arith.constant 0 : i32
    %c0_i32_0 = arith.constant 0 : i32
    %c0_i32_1 = arith.constant 0 : i32
    return %c0_i32, %c0_i32_0 : i32, i32
  }
  func.func @transform_3(%arg0: i32) -> (i32, i32) {
    %c0_i32 = arith.constant 0 : i32
    %c0_i32_0 = arith.constant 0 : i32
    %c0_i32_1 = arith.constant 0 : i32
    return %c0_i32, %c0_i32_0 : i32, i32
  }
  func.func @transform_4(%arg0: i32) -> (i32, i32) {
    %c0_i32 = arith.constant 0 : i32
    %c0_i32_0 = arith.constant 0 : i32
    %c0_i32_1 = arith.constant 0 : i32
    return %c0_i32, %c0_i32_0 : i32, i32
  }
  func.func @transform_5(%arg0: i32) -> (i32, i32) {
    %c0_i32 = arith.constant 0 : i32
    %c0_i32_0 = arith.constant 0 : i32
    %c0_i32_1 = arith.constant 0 : i32
    return %c0_i32, %c0_i32_0 : i32, i32
  }
  func.func @transform_6(%arg0: i32) -> (i32, i32) {
    %c0_i32 = arith.constant 0 : i32
    %c0_i32_0 = arith.constant 0 : i32
    %c0_i32_1 = arith.constant 0 : i32
    return %c0_i32, %c0_i32_0 : i32, i32
  }
  func.func @transform_7(%arg0: i32) -> (i32, i32) {
    %c0_i32 = arith.constant 0 : i32
    %c0_i32_0 = arith.constant 0 : i32
    %c0_i32_1 = arith.constant 0 : i32
    return %c0_i32, %c0_i32_0 : i32, i32
  }
  func.func @transform_8(%arg0: i32) -> (i32, i32) {
    %c0_i32 = arith.constant 0 : i32
    %c0_i32_0 = arith.constant 0 : i32
    %c0_i32_1 = arith.constant 0 : i32
    return %c0_i32, %c0_i32_0 : i32, i32
  }
  func.func @transform_9(%arg0: i32) -> (i32, i32) {
    %c0_i32 = arith.constant 0 : i32
    %c0_i32_0 = arith.constant 0 : i32
    return %arg0, %c0_i32 : i32, i32
  }
  func.func @transform_10(%arg0: i32) -> (i32, i32) {
    %c0_i32 = arith.constant 0 : i32
    %c0_i32_0 = arith.constant 0 : i32
    return %arg0, %c0_i32 : i32, i32
  }
}

</mosaic_0001>

<bundles_post_ra>
// kernel: mdn_forward.1
= control target key start
LH: loop header
LB: loop body
LE: loop exit
PB: predicated region body
PF: predicated region fallthrough
CT: control target
= control target key end

     0   :  { %v600_v2 = vmov 0.0|0.0   ;;  %vm601_vm0 = vmmov 0   ;;  %v602_v4 = vmov 0.0   ;;  %vm45_vm1 = vcmask 130048   ;;  %s790_s0 = inlined_call_operand.vmem [shape: f32[8,16], index: 0, kind: input, shape index: {}]   ;;  %s791_s1 = inlined_call_operand.vmem [shape: f32[16,64], index: 1, kind: input, shape index: {}]   ;;  %s792_s2 = inlined_call_operand.vmem [shape: f32[1,64], index: 2, kind: input, shape index: {}]   ;;  %s793_s3 = inlined_call_operand.vmem [shape: f32[64,64], index: 3, kind: input, shape index: {}]   ;;  %s794_s4 = inlined_call_operand.vmem [shape: f32[1,64], index: 4, kind: input, shape index: {}]   ;;  %s795_s5 = inlined_call_operand.vmem [shape: f32[64,5], index: 5, kind: input, shape index: {}]   ;;  %s796_s6 = inlined_call_operand.vmem [shape: f32[1,5], index: 6, kind: input, shape index: {}]   ;;  %s797_s7 = inlined_call_operand.vmem [shape: f32[64,40], index: 7, kind: input, shape index: {}]   ;;  %s798_s8 = inlined_call_operand.vmem [shape: f32[1,40], index: 8, kind: input, shape index: {}]   ;;  %s799_s9 = inlined_call_operand.hbm [shape: f32[8,5], index: 9, kind: output, shape index: {0}]   ;;  %s800_s10 = inlined_call_operand.vmem [shape: f32[8,40], index: 10, kind: output, shape index: {1}]  }
   0x1   :  { %v36_v0 = vld [vmem:[%s791_s1] sm:$0xff]  ;;  %v37_v1 = vld [vmem:[%s791_s1 + $0x8] sm:$0xff]  ;;  %527 = vmatprep.subr.bf16.mxu0 %v600_v2  ;;  %467 = vmatprep.mubr.msk.f32.mxu0 %vm601_vm0, %v602_v4  ;;  %v122_v7 = vld [vmem:[%s793_s3 + $0x10] sm:$0xff] }
   0x2   :  { %v528_v3 = vpack.c.bf16 %v37_v1, %v36_v0  ;;  %v120_v5 = vld [vmem:[%s793_s3] sm:$0xff]  ;;  %v121_v6 = vld [vmem:[%s793_s3 + $0x8] sm:$0xff]  ;;  %530 = vmatprep.subr.bf16.mxu1 %v600_v2  ;;  %v123_v9 = vld [vmem:[%s793_s3 + $0x18] sm:$0xff]  ;;  %486 = vmatprep.mubr.msk.f32.mxu1 %vm601_vm0, %v602_v4 }
   0x3   :  { %v531_v8 = vpack.c.bf16 %v121_v6, %v120_v5  ;;  %v35_v10 = vld [vmem:[%s790_s0] sm:$0xff] }
   0x4   :  { %529 = vmatpush3.bf16.msra.mxu0 %v528_v3 }
   0x5   :  { %16 = vsyncpa [#allocation3], 0  ;;  %532 = vmatpush3.bf16.msra.mxu1 %v531_v8  ;;  %v534_v11 = vpack.c.bf16 %v123_v9, %v122_v7  ;;  %542 = vmatprep.subr.bf16.mxu0 %v600_v2  ;;  %v124_v12 = vld [vmem:[%s793_s3 + $0x20] sm:$0xff]  ;;  %v125_v13 = vld [vmem:[%s793_s3 + $0x28] sm:$0xff]  ;;  %vm135_vm2 = vcmask 523264   ;;  %vm298_vm3 = vcmask 39936   ;;  %v398_v63 = vlaneseq }
   0x6   :  { %533 = vmatprep.subr.bf16.mxu1 %v600_v2  ;;  %v537_v14 = vpack.c.bf16 %v125_v13, %v124_v12  ;;  %v126_v15 = vld [vmem:[%s793_s3 + $0x30] sm:$0xff]  ;;  %v127_v16 = vld [vmem:[%s793_s3 + $0x38] sm:$0xff]  ;;  %v210_v18 = vld [vmem:[%s795_s5] sm:$0xff]  ;;  %vm405_vm5 = vcmask 326656  }
   0x7   :  { %468 = vmatmul.mubr.msk.f32.vlgmr.msra.gmra.mrb[0].mxu0 %vm45_vm1, %v35_v10  ;;  %v540_v17 = vpack.c.bf16 %v127_v16, %v126_v15  ;;  %v211_v19 = vld [vmem:[%s795_s5 + $0x8] sm:$0xff]  ;;  %v212_v21 = vld [vmem:[%s795_s5 + $0x10] sm:$0xff]  ;;  %v213_v22 = vld [vmem:[%s795_s5 + $0x18] sm:$0xff]  ;;  %v399_v0 = vand.u32 127, %v398_v63 }
   0x8   :  { %505 = vmatprep.mubr.msk.f32.mxu0 %vm601_vm0, %v602_v4  ;;  %v543_v20 = vpack.c.bf16 %v211_v19, %v210_v18  ;;  %v546_v23 = vpack.c.bf16 %v213_v22, %v212_v21  ;;  %v214_v24 = vld [vmem:[%s795_s5 + $0x20] sm:$0xff]  ;;  %v215_v25 = vld [vmem:[%s795_s5 + $0x28] sm:$0xff]  ;;  %v315_v35 = vld [vmem:[%s797_s7 + $0x10] sm:$0xff] }
   0x9   :  { %535 = vmatpush3.bf16.msra.mxu1 %v534_v11  ;;  %v549_v26 = vpack.c.bf16 %v215_v25, %v214_v24  ;;  %v425_v27 = vld [vmem:[%s792_s2] ss:$0 sm:$0xff]  ;;  %v314_v29 = vld [vmem:[%s797_s7 + $0x8] sm:$0xff]  ;;  %v316_v36 = vld [vmem:[%s797_s7 + $0x18] sm:$0xff]  ;;  %vm400_vm4 = vcmp.ge.s32.totalorder %v399_v0, 20 }
   0xa   :  { %536 = vmatprep.subr.bf16.mxu1 %v600_v2  ;;  %544 = vmatpush3.bf16.msra.mxu0 %v543_v20  ;;  %v313_v28 = vld [vmem:[%s797_s7] sm:$0xff]  ;;  %v558_v37 = vpack.c.bf16 %v316_v36, %v315_v35  ;;  %v318_v39 = vld [vmem:[%s797_s7 + $0x28] sm:$0xff]  ;;  %v216_v41 = vld [vmem:[%s795_s5 + $0x30] sm:$0xff] }
   0xb   :  { %545 = vmatprep.subr.bf16.mxu0 %v600_v2  ;;  %v555_v33 = vpack.c.bf16 %v314_v29, %v313_v28  ;;  %v317_v38 = vld [vmem:[%s797_s7 + $0x20] sm:$0xff]  ;;  %v217_v42 = vld [vmem:[%s795_s5 + $0x38] sm:$0xff]  ;;  %v319_v43 = vld [vmem:[%s797_s7 + $0x30] sm:$0xff] }
   0xc   :  { %v561_v40 = vpack.c.bf16 %v318_v39, %v317_v38  ;;  %v552_v44 = vpack.c.bf16 %v217_v42, %v216_v41  ;;  %v320_v45 = vld [vmem:[%s797_s7 + $0x38] sm:$0xff]  ;;  %v427_v47 = vld [vmem:[%s794_s4] ss:$0 sm:$0xff] }
   0xd   :  { %538 = vmatpush3.bf16.msra.mxu1 %v537_v14  ;;  %v564_v46 = vpack.c.bf16 %v320_v45, %v319_v43  ;;  %v429_v52 = vld [vmem:[%s796_s6] ss:$0 sm:$0xff] }
   0xe   :  { %539 = vmatprep.subr.bf16.mxu1 %v600_v2  ;;  %547 = vmatpush3.bf16.msra.mxu0 %v546_v23  ;;  %v431_v53 = vld [vmem:[%s798_s8] ss:$0 sm:$0xff]  ;;  %s603_s8 = smov [#allocation2]  }
   0xf   :  { %548 = vmatprep.subr.bf16.mxu0 %v600_v2  ;;  %s413_s25 = sshll.u32 %s603_s8, 4  ;;  %s414_s25 = int_to_ptr.vmem [resolvable:$true] %s413_s25 }
  0x10   :  { %p581_p1 = scmp.lt.s32.totalorder %s414_s25, %s414_s25 }
  0x11   :  { %541 = vmatpush3.bf16.msra.mxu1 %v540_v17 }
  0x12   :  { %554 = vmatprep.subr.bf16.mxu1 %v600_v2  ;;  %550 = vmatpush3.bf16.msra.mxu0 %v549_v26 }
  0x13   :  { %551 = vmatprep.subr.bf16.mxu0 %v600_v2 }
  0x16   :  { %553 = vmatpush3.bf16.msra.mxu0 %v552_v44 }
  0xda   :  { %v115_v30 = vpop.f32.mrb[0].mxu0 }
  0xdb   :  { %v116_v31 = vadd.f32 %v425_v27, %v115_v30  ;;  %v469_v32 = vpop.f32.mrb[1].mxu0 }
  0xdd   :  { %v119_v34 = vmax.f32 %v116_v31, 0.0 }
  0xdf   :  { %487 = vmatmul.mubr.msk.f32.vlgmr.msra.gmra.mrb[0].mxu1 %vm135_vm2, %v119_v34 }
  0xe0   :  { %556 = vmatpush3.bf16.msra.mxu1 %v555_v33  ;;  %524 = vmatprep.mubr.msk.f32.mxu1 %vm601_vm0, %v602_v4 }
  0xe1   :  { %557 = vmatprep.subr.bf16.mxu1 %v600_v2 }
  0xe4   :  { %559 = vmatpush3.bf16.msra.mxu1 %v558_v37 }
  0xe5   :  { %560 = vmatprep.subr.bf16.mxu1 %v600_v2 }
  0xe8   :  { %562 = vmatpush3.bf16.msra.mxu1 %v561_v40 }
  0xe9   :  { %563 = vmatprep.subr.bf16.mxu1 %v600_v2 }
  0xec   :  { %565 = vmatpush3.bf16.msra.mxu1 %v564_v46 }
 0x1b2   :  { %v205_v48 = vpop.f32.mrb[0].mxu1 }
 0x1b3   :  { %v206_v49 = vadd.f32 %v427_v47, %v205_v48  ;;  %v488_v50 = vpop.f32.mrb[1].mxu1 }
 0x1b5   :  { %v209_v51 = vmax.f32 %v206_v49, 0.0 }
 0x1b7   :  { %506 = vmatmul.mubr.msk.f32.vlgmr.msra.gmra.mrb[2].mxu0 %vm135_vm2, %v209_v51  ;;  %525 = vmatmul.mubr.msk.f32.vlgmr.msra.gmra.mrb[2].mxu1 %vm135_vm2, %v209_v51 }
 0x28a   :  { %v294_v54 = vpop.f32.mrb[2].mxu0  ;;  %v394_v55 = vpop.f32.mrb[2].mxu1 }
 0x28b   :  { %v295_v56 = vadd.f32 %v429_v52, %v294_v54  ;;  %v395_v57 = vadd.f32 %v431_v53, %v394_v55  ;;  %v507_v58 = vpop.f32.mrb[3].mxu0  ;;  %v526_v59 = vpop.f32.mrb[3].mxu1 }
 0x28d   :  { %v401_v60 = vadd.f32 1e-06, %v395_v57  ;;  %v299_v61 = vsel %vm298_vm3, %v295_v56, -inf }
 0x28e   :  { %300 = vmax.xlane.f32.xlu0 %v299_v61 }
 0x28f   :  { %v402_v62 = vmul.f32 1.442695, %v401_v60 }
 0x291   :  { %570 = vpow2.f32 %v402_v62 }
 0x29b   :  { %v571_v1 = vpop.eup %570 }
 0x29c   :  { %v404_v2 = vsel %vm400_vm4, %v571_v1, %v395_v57 }
 0x29d   :  { %406 = vst.msk [vmem:[%s800_s10] sm:$0xff] %vm405_vm5, %v404_v2  ;;  %s576_s10 = scalar_lea.vmem %s414_s25, 128 }
 0x29e   :  { %p577_p0 = scmp.ne.s32.totalorder %s414_s25, %s576_s10  ;;  %p582_p2 = scmp.lt.s32.totalorder %s576_s10, %s576_s10 }
 0x2a0   :  { %p583_p3 = por %p582_p2, %p581_p1 }
 0x2a2   :  { %p584_p4 = pnand %p583_p3, %p577_p0 }
 0x31b   :  { %v301_v3 = vpop.xlane.xlu0 %300 }
 0x31c   :  { %v302_v4 = vsub.f32 %v295_v56, %v301_v3 }
 0x31e   :  { %v303_v5 = vmul.f32 1.442695, %v302_v4 }
 0x320   :  { %572 = vpow2.f32 %v303_v5 }
 0x32a   :  { %v573_v6 = vpop.eup %572 }
 0x32b   :  { %v305_v7 = vsel %vm298_vm3, %v573_v6, 0.0 }
 0x32c   :  { %306 = vadd.xlane.f32.xlu0 %v305_v7 }
 0x3b9   :  { %v307_v8 = vpop.xlane.xlu0 %306 }
 0x3ba   :  { %574 = vlog2.f32 %v307_v8 }
 0x3c4   :  { %v575_v9 = vpop.eup %574 }
 0x3c5   :  { %v309_v10 = vmul.f32 0.6931472, %v575_v9 }
 0x3c7   :  { %v310_v11 = vadd.f32 %v309_v10, %v301_v3 }
 0x3c9   :  { %v311_v12 = vsub.f32 %v295_v56, %v310_v11 }
 0x3cb   :  { %312 = vst.msk [vmem:[#allocation2] sm:$0xff] %vm298_vm3, %v311_v12 }
 0x3cc   :  { %587 = shalt.err (!%p584_p4)
}
 0x3cd   :  { %s588_s28 = scalar_lea.hbm %s799_s9, 128 }
 0x3ce   :  { %p589_p5 = scmp.ne.s32.totalorder %s799_s9, %s588_s28  ;;  %p592_p6 = scmp.lt.u32.totalorder %s588_s28, %s799_s9 }
 0x3d0   :  { %p594_p7 = pnand %p592_p6, %p589_p5 }
 0x3d2   :  { %597 = shalt.err (!%p594_p7)
}
 0x3d3   :  { %416 = dma.vmem_to_hbm [thread:$0]  %s414_s25, 128, %s799_s9, [#allocation3]  }
 0x3d4   :  { %598 = dma.done.wait [#allocation3], 128  }
 0x3d5   :  { %599 = vsyncadd [#allocation3], 4294967168 }
 0x3d6   :  { %424 = vsyncpa [#allocation3], 1 }

</bundles_post_ra>
